<compile_context>
chip_gen: v5e
topology: v5e:2x2
jax: 0.10.0
libtpu: 0.0.40
codegen_flags: <defaults>
</compile_context>

<pallas_src>
import functools
import numpy as np

import jax
import jax.numpy as jnp
from jax import lax
from jax.experimental import pallas as pl
from jax.experimental.pallas import tpu as pltpu


# ----------------------------------------------------------------------------
# Fused Pallas kernel (one chunk of `images_per_step` images per grid step)
# ----------------------------------------------------------------------------
def _basic_block_kernel(x_ref, w1s_ref, s1_ref, b1_ref, w2s_ref, s2_ref, b2_ref,
                        o_ref, *, H, W):
    HW = H * W
    _, Cout, L = o_ref.shape              # L = images_per_step * H * W
    xT = x_ref[0]                          # (Cin, L) f32, channel-major

    # In-kernel boundary masks, built once and shared by both convs.
    # Positions whose 3x3 tap source falls outside its own image are zeroed,
    # which also kills every cross-image / chunk-wrap roll contribution.
    lane = lax.broadcasted_iota(jnp.int32, (Cout, L), 1)
    if (HW & (HW - 1)) == 0 and (W & (W - 1)) == 0:
        pix = jnp.bitwise_and(lane, HW - 1)      # lane % HW  (power-of-two fast path)
        col = jnp.bitwise_and(lane, W - 1)       # lane % W
    else:
        pix = lane % HW                          # generic fallback
        col = lane % W
    # row >= 1  <=>  pix >= W ; row <= H-2  <=>  pix < HW - W
    row_ok = {0: pix >= W, 1: None, 2: pix < (HW - W)}
    col_ok = {0: col >= 1, 1: None, 2: col <= (W - 2)}
    tap_conds = []
    for dh in range(3):
        for dw in range(3):
            cond = None
            for c in (row_ok[dh], col_ok[dw]):
                if c is not None:
                    cond = c if cond is None else (cond & c)
            tap_conds.append(cond)

    def conv3x3_from_stack(z):
        # z: (9*Cout[+extra], L) f32 — per-tap, per-pixel contributions from a
        # single M-stacked MXU dot.  Roll each tap's (Cout, L) slice onto the
        # pixels it feeds, mask image boundaries, accumulate (all in f32).
        acc = jnp.zeros((Cout, L), jnp.float32)
        o = 0
        for dh in range(3):
            for dw in range(3):
                zo = z[o * Cout:(o + 1) * Cout, :]
                s = (dh - 1) * W + (dw - 1)           # flattened spatial shift
                if s != 0:
                    zo = pltpu.roll(zo, shift=(-s) % L, axis=1)
                if tap_conds[o] is not None:
                    zo = jnp.where(tap_conds[o], zo, 0.0)
                acc = acc + zo
                o += 1
        return acc

    # --- Stage 1: ONE MXU dot covers all 9 conv1 taps AND the 1x1 identity
    # conv (its weight occupies the last Cout rows of the stack). ---
    x_bf = xT.astype(jnp.bfloat16)                      # one cast per conv
    z1 = jnp.dot(w1s_ref[...], x_bf, preferred_element_type=jnp.float32)
    ident = z1[9 * Cout:10 * Cout, :]                   # 1x1 identity conv
    y = conv3x3_from_stack(z1)
    y = y * s1_ref[...] + b1_ref[...]                   # bn1 (+ eval dropout2d)
    y = jnp.maximum(y, 0.0)                             # relu

    # --- Stage 2: ONE MXU dot for conv2's 9 taps. ---
    z2 = jnp.dot(w2s_ref[...], y.astype(jnp.bfloat16),
                 preferred_element_type=jnp.float32)
    y = conv3x3_from_stack(z2)
    y = y * s2_ref[...] + b2_ref[...]                   # bn2 (+ eval dropout2d)

    # pool = Identity; out = relu(identity + y); lane-dense (Cout, L) store.
    o_ref[0] = jnp.maximum(ident + y, 0.0).astype(o_ref.dtype)


# ----------------------------------------------------------------------------
# Plain-JAX glue
# ----------------------------------------------------------------------------
def basic_block_forward(x_nchw, params, *, images_per_step=None,
                        out_dtype=jnp.bfloat16):
    """x_nchw: (N, Cin, H, W) float32 (PyTorch NCHW). Returns (N, Cout, H, W)."""
    w1s, s1, b1, w2s, s2, b2 = params
    N, Cin, H, W = x_nchw.shape
    Cout = s1.shape[0]
    HW = H * W

    if images_per_step is None:
        # Fold as many images as possible into the lane axis while keeping
        # >= 2 "parallel" grid steps (v7x has 2 TensorCores per chip).
        images_per_step = max(1, N // 2)
    while N % images_per_step:
        images_per_step -= 1
    num_chunks = N // images_per_step
    L = images_per_step * HW

    # NCHW -> (chunks, Cin, images_per_step*HW): batch folded into the lane
    # axis (the transpose is free when images_per_step == 1).
    x = x_nchw.astype(jnp.float32).reshape(num_chunks, images_per_step, Cin, HW)
    x = x.transpose(0, 2, 1, 3).reshape(num_chunks, Cin, L)

    kernel = functools.partial(_basic_block_kernel, H=H, W=W)
    out = pl.pallas_call(
        kernel,
        out_shape=jax.ShapeDtypeStruct((num_chunks, Cout, L), out_dtype),
        grid=(num_chunks,),
        in_specs=[
            pl.BlockSpec((1, Cin, L), lambda g: (g, 0, 0)),
            # Grid-invariant operands (M-stacked weights, folded BN affine).
            pl.BlockSpec((10 * Cout, Cin), lambda g: (0, 0)),
            pl.BlockSpec((Cout, 1), lambda g: (0, 0)),
            pl.BlockSpec((Cout, 1), lambda g: (0, 0)),
            pl.BlockSpec((9 * Cout, Cout), lambda g: (0, 0)),
            pl.BlockSpec((Cout, 1), lambda g: (0, 0)),
            pl.BlockSpec((Cout, 1), lambda g: (0, 0)),
        ],
        out_specs=pl.BlockSpec((1, Cout, L), lambda g: (g, 0, 0)),
        compiler_params=pltpu.CompilerParams(
            dimension_semantics=("parallel",)),
    )(x, w1s, s1, b1, w2s, s2, b2)

    out = out.reshape(num_chunks, Cout, images_per_step, HW)
    out = out.transpose(0, 2, 1, 3).reshape(N, Cout, H, W)   # back to NCHW
    return out


# ----------------------------------------------------------------------------
# Pure-JAX reference (sanity check)
# ----------------------------------------------------------------------------
def reference_forward(x_nchw, ref_params):
    w1, s1, b1, w2, s2, b2, wid = ref_params   # HWIO weights, (Cout,) scale/bias
    x = jnp.transpose(x_nchw, (0, 2, 3, 1)).astype(jnp.float32)
    Cin, Cout = x.shape[-1], w1.shape[-1]
    conv = lambda a, w: lax.conv_general_dilated(
        a, w, (1, 1), "SAME", dimension_numbers=("NHWC", "HWIO", "NHWC"))
    ident = conv(x, wid.reshape(1, 1, Cin, Cout))
    y = conv(x, w1) * s1 + b1
    y = jnp.maximum(y, 0.0)
    y = conv(y, w2) * s2 + b2
    out = jnp.maximum(ident + y, 0.0)
    return jnp.transpose(out, (0, 3, 1, 2))


# ----------------------------------------------------------------------------
if __name__ == "__main__":
    N, Cin, Cout, H, W = 2, 4, 8, 16, 16
    eps = 1e-5

    key = jax.random.PRNGKey(0)
    keys = jax.random.split(key, 12)
    x = jax.random.normal(keys[0], (N, Cin, H, W), jnp.float32)

    # Deterministic parameter init (HWIO conv weights, folded BN running stats).
    w1 = 0.1 * jax.random.normal(keys[1], (3, 3, Cin, Cout), jnp.float32)
    w2 = 0.1 * jax.random.normal(keys[2], (3, 3, Cout, Cout), jnp.float32)
    wid = 0.1 * jax.random.normal(keys[3], (Cin, Cout), jnp.float32)

    gamma1 = 1.0 + 0.1 * jax.random.normal(keys[4], (Cout,), jnp.float32)
    beta1 = 0.1 * jax.random.normal(keys[5], (Cout,), jnp.float32)
    mean1 = 0.1 * jax.random.normal(keys[6], (Cout,), jnp.float32)
    var1 = 1.0 + 0.1 * jax.random.uniform(keys[7], (Cout,), jnp.float32)
    gamma2 = 1.0 + 0.1 * jax.random.normal(keys[8], (Cout,), jnp.float32)
    beta2 = 0.1 * jax.random.normal(keys[9], (Cout,), jnp.float32)
    mean2 = 0.1 * jax.random.normal(keys[10], (Cout,), jnp.float32)
    var2 = 1.0 + 0.1 * jax.random.uniform(keys[11], (Cout,), jnp.float32)

    s1 = gamma1 / jnp.sqrt(var1 + eps)
    b1 = beta1 - mean1 * s1
    s2 = gamma2 / jnp.sqrt(var2 + eps)
    b2 = beta2 - mean2 * s2

    # Kernel-layout params: M-stacked bf16 tap weights (tap-major, Cout rows
    # per tap; conv1 stack carries the 1x1 identity weight as its last block),
    # plus (Cout, 1) f32 folded BN scale/bias.
    w1_taps = jnp.transpose(w1.reshape(9, Cin, Cout), (0, 2, 1)).reshape(9 * Cout, Cin)
    w1s = jnp.concatenate([w1_taps, wid.T], axis=0).astype(jnp.bfloat16)     # (10*Cout, Cin)
    w2s = jnp.transpose(w2.reshape(9, Cout, Cout), (0, 2, 1)).reshape(
        9 * Cout, Cout).astype(jnp.bfloat16)                                 # (9*Cout, Cout)
    params = (w1s, s1.reshape(Cout, 1), b1.reshape(Cout, 1),
              w2s, s2.reshape(Cout, 1), b2.reshape(Cout, 1))

    out = jax.jit(basic_block_forward)(x, params)
    out = jax.block_until_ready(out)
    assert out.shape == (N, Cout, H, W)

    ref_params = (w1, s1, b1, w2, s2, b2, wid)
    ref = reference_forward(x, ref_params)
    np.testing.assert_allclose(np.asarray(out.astype(jnp.float32)),
                               np.asarray(ref), rtol=5e-2, atol=5e-2)
    print("KERNEL_OK")
</pallas_src>

<mosaic_0001>
module attributes {stable_mosaic.version = 11 : i64} {
  func.func @_basic_block_kernel(%arg0: i32, %arg1: memref<1x4x256xf32, #tpu.memory_space<vmem>>, %arg2: memref<80x4xbf16, #tpu.memory_space<vmem>>, %arg3: memref<8x1xf32, #tpu.memory_space<vmem>>, %arg4: memref<8x1xf32, #tpu.memory_space<vmem>>, %arg5: memref<72x8xbf16, #tpu.memory_space<vmem>>, %arg6: memref<8x1xf32, #tpu.memory_space<vmem>>, %arg7: memref<8x1xf32, #tpu.memory_space<vmem>>, %arg8: memref<1x8x256xbf16, #tpu.memory_space<vmem>>) attributes {dimension_semantics = [#tpu.dimension_semantics<parallel>], iteration_bounds = array<i64: 2>, scalar_prefetch = 0 : i64, scratch_operands = 0 : i64, tpu.core_type = #tpu.core_type<tc>, window_params = [{transform_indices = @transform_0, window_bounds = array<i64: 1, 4, 256>}, {pipeline_mode = #tpu.pipeline_mode<synchronous>, transform_indices = @transform_1, window_bounds = array<i64: 80, 4>}, {pipeline_mode = #tpu.pipeline_mode<synchronous>, transform_indices = @transform_2, window_bounds = array<i64: 8, 1>}, {pipeline_mode = #tpu.pipeline_mode<synchronous>, transform_indices = @transform_3, window_bounds = array<i64: 8, 1>}, {pipeline_mode = #tpu.pipeline_mode<synchronous>, transform_indices = @transform_4, window_bounds = array<i64: 72, 8>}, {pipeline_mode = #tpu.pipeline_mode<synchronous>, transform_indices = @transform_5, window_bounds = array<i64: 8, 1>}, {pipeline_mode = #tpu.pipeline_mode<synchronous>, transform_indices = @transform_6, window_bounds = array<i64: 8, 1>}, {transform_indices = @transform_7, window_bounds = array<i64: 1, 8, 256>}]} {
    %c0 = arith.constant 0 : index
    %c0_0 = arith.constant 0 : index
    %c0_1 = arith.constant 0 : index
    %0 = vector.load %arg1[%c0, %c0_0, %c0_1] : memref<1x4x256xf32, #tpu.memory_space<vmem>>, vector<1x4x256xf32>
    %1 = vector.shape_cast %0 : vector<1x4x256xf32> to vector<4x256xf32>
    %2 = tpu.iota {dimensions = array<i32: 1>} : vector<8x256xi32>
    %c255_i32 = arith.constant 255 : i32
    %3 = vector.broadcast %c255_i32 : i32 to vector<8x256xi32>
    %4 = arith.andi %2, %3 : vector<8x256xi32>
    %c15_i32 = arith.constant 15 : i32
    %5 = vector.broadcast %c15_i32 : i32 to vector<8x256xi32>
    %6 = arith.andi %2, %5 : vector<8x256xi32>
    %c16_i32 = arith.constant 16 : i32
    %7 = vector.broadcast %c16_i32 : i32 to vector<8x256xi32>
    %8 = arith.cmpi sge, %4, %7 : vector<8x256xi32>
    %c240_i32 = arith.constant 240 : i32
    %9 = vector.broadcast %c240_i32 : i32 to vector<8x256xi32>
    %10 = arith.cmpi slt, %4, %9 : vector<8x256xi32>
    %c1_i32 = arith.constant 1 : i32
    %11 = vector.broadcast %c1_i32 : i32 to vector<8x256xi32>
    %12 = arith.cmpi sge, %6, %11 : vector<8x256xi32>
    %c14_i32 = arith.constant 14 : i32
    %13 = vector.broadcast %c14_i32 : i32 to vector<8x256xi32>
    %14 = arith.cmpi sle, %6, %13 : vector<8x256xi32>
    %15 = arith.andi %8, %12 : vector<8x256xi1>
    %16 = arith.andi %8, %14 : vector<8x256xi1>
    %17 = arith.andi %10, %12 : vector<8x256xi1>
    %18 = arith.andi %10, %14 : vector<8x256xi1>
    %19 = arith.truncf %1 : vector<4x256xf32> to vector<4x256xbf16>
    %c0_2 = arith.constant 0 : index
    %c0_3 = arith.constant 0 : index
    %20 = vector.load %arg2[%c0_2, %c0_3] : memref<80x4xbf16, #tpu.memory_space<vmem>>, vector<80x4xbf16>
    %cst = arith.constant dense<0.000000e+00> : vector<80x256xf32>
    %21 = tpu.matmul %20, %19, %cst {dimension_numbers = #tpu.dot_dimension_numbers<[1], [0], [0], [1], [0, 0, 1, 1], [], []>} : vector<80x4xbf16>, vector<4x256xbf16>, vector<80x256xf32> -> vector<80x256xf32>
    %22 = vector.extract_strided_slice %21 {offsets = [72, 0], sizes = [8, 256], strides = [1, 1]} : vector<80x256xf32> to vector<8x256xf32>
    %cst_4 = arith.constant 0.000000e+00 : f32
    %23 = vector.broadcast %cst_4 : f32 to vector<8x256xf32>
    %24 = vector.extract_strided_slice %21 {offsets = [0, 0], sizes = [8, 256], strides = [1, 1]} : vector<80x256xf32> to vector<8x256xf32>
    %c17_i32 = arith.constant 17 : i32
    %25 = tpu.dynamic_rotate %24 by %c17_i32 dim 1 : vector<8x256xf32>, i32 -> vector<8x256xf32>
    %cst_5 = arith.constant 0.000000e+00 : f32
    %26 = vector.broadcast %cst_5 : f32 to vector<8x256xf32>
    %27 = arith.select %15, %25, %26 : vector<8x256xi1>, vector<8x256xf32>
    %28 = arith.addf %23, %27 : vector<8x256xf32>
    %29 = vector.extract_strided_slice %21 {offsets = [8, 0], sizes = [8, 256], strides = [1, 1]} : vector<80x256xf32> to vector<8x256xf32>
    %c16_i32_6 = arith.constant 16 : i32
    %30 = tpu.dynamic_rotate %29 by %c16_i32_6 dim 1 : vector<8x256xf32>, i32 -> vector<8x256xf32>
    %cst_7 = arith.constant 0.000000e+00 : f32
    %31 = vector.broadcast %cst_7 : f32 to vector<8x256xf32>
    %32 = arith.select %8, %30, %31 : vector<8x256xi1>, vector<8x256xf32>
    %33 = arith.addf %28, %32 : vector<8x256xf32>
    %34 = vector.extract_strided_slice %21 {offsets = [16, 0], sizes = [8, 256], strides = [1, 1]} : vector<80x256xf32> to vector<8x256xf32>
    %c15_i32_8 = arith.constant 15 : i32
    %35 = tpu.dynamic_rotate %34 by %c15_i32_8 dim 1 : vector<8x256xf32>, i32 -> vector<8x256xf32>
    %cst_9 = arith.constant 0.000000e+00 : f32
    %36 = vector.broadcast %cst_9 : f32 to vector<8x256xf32>
    %37 = arith.select %16, %35, %36 : vector<8x256xi1>, vector<8x256xf32>
    %38 = arith.addf %33, %37 : vector<8x256xf32>
    %39 = vector.extract_strided_slice %21 {offsets = [24, 0], sizes = [8, 256], strides = [1, 1]} : vector<80x256xf32> to vector<8x256xf32>
    %c1_i32_10 = arith.constant 1 : i32
    %40 = tpu.dynamic_rotate %39 by %c1_i32_10 dim 1 : vector<8x256xf32>, i32 -> vector<8x256xf32>
    %cst_11 = arith.constant 0.000000e+00 : f32
    %41 = vector.broadcast %cst_11 : f32 to vector<8x256xf32>
    %42 = arith.select %12, %40, %41 : vector<8x256xi1>, vector<8x256xf32>
    %43 = arith.addf %38, %42 : vector<8x256xf32>
    %44 = vector.extract_strided_slice %21 {offsets = [32, 0], sizes = [8, 256], strides = [1, 1]} : vector<80x256xf32> to vector<8x256xf32>
    %45 = arith.addf %43, %44 : vector<8x256xf32>
    %46 = vector.extract_strided_slice %21 {offsets = [40, 0], sizes = [8, 256], strides = [1, 1]} : vector<80x256xf32> to vector<8x256xf32>
    %c255_i32_12 = arith.constant 255 : i32
    %47 = tpu.dynamic_rotate %46 by %c255_i32_12 dim 1 : vector<8x256xf32>, i32 -> vector<8x256xf32>
    %cst_13 = arith.constant 0.000000e+00 : f32
    %48 = vector.broadcast %cst_13 : f32 to vector<8x256xf32>
    %49 = arith.select %14, %47, %48 : vector<8x256xi1>, vector<8x256xf32>
    %50 = arith.addf %45, %49 : vector<8x256xf32>
    %51 = vector.extract_strided_slice %21 {offsets = [48, 0], sizes = [8, 256], strides = [1, 1]} : vector<80x256xf32> to vector<8x256xf32>
    %c241_i32 = arith.constant 241 : i32
    %52 = tpu.dynamic_rotate %51 by %c241_i32 dim 1 : vector<8x256xf32>, i32 -> vector<8x256xf32>
    %cst_14 = arith.constant 0.000000e+00 : f32
    %53 = vector.broadcast %cst_14 : f32 to vector<8x256xf32>
    %54 = arith.select %17, %52, %53 : vector<8x256xi1>, vector<8x256xf32>
    %55 = arith.addf %50, %54 : vector<8x256xf32>
    %56 = vector.extract_strided_slice %21 {offsets = [56, 0], sizes = [8, 256], strides = [1, 1]} : vector<80x256xf32> to vector<8x256xf32>
    %c240_i32_15 = arith.constant 240 : i32
    %57 = tpu.dynamic_rotate %56 by %c240_i32_15 dim 1 : vector<8x256xf32>, i32 -> vector<8x256xf32>
    %cst_16 = arith.constant 0.000000e+00 : f32
    %58 = vector.broadcast %cst_16 : f32 to vector<8x256xf32>
    %59 = arith.select %10, %57, %58 : vector<8x256xi1>, vector<8x256xf32>
    %60 = arith.addf %55, %59 : vector<8x256xf32>
    %61 = vector.extract_strided_slice %21 {offsets = [64, 0], sizes = [8, 256], strides = [1, 1]} : vector<80x256xf32> to vector<8x256xf32>
    %c239_i32 = arith.constant 239 : i32
    %62 = tpu.dynamic_rotate %61 by %c239_i32 dim 1 : vector<8x256xf32>, i32 -> vector<8x256xf32>
    %cst_17 = arith.constant 0.000000e+00 : f32
    %63 = vector.broadcast %cst_17 : f32 to vector<8x256xf32>
    %64 = arith.select %18, %62, %63 : vector<8x256xi1>, vector<8x256xf32>
    %65 = arith.addf %60, %64 : vector<8x256xf32>
    %c0_18 = arith.constant 0 : index
    %c0_19 = arith.constant 0 : index
    %66 = vector.load %arg3[%c0_18, %c0_19] : memref<8x1xf32, #tpu.memory_space<vmem>>, vector<8x1xf32>
    %67 = vector.broadcast %66 : vector<8x1xf32> to vector<8x256xf32>
    %68 = arith.mulf %65, %67 : vector<8x256xf32>
    %c0_20 = arith.constant 0 : index
    %c0_21 = arith.constant 0 : index
    %69 = vector.load %arg4[%c0_20, %c0_21] : memref<8x1xf32, #tpu.memory_space<vmem>>, vector<8x1xf32>
    %70 = vector.broadcast %69 : vector<8x1xf32> to vector<8x256xf32>
    %71 = arith.addf %68, %70 : vector<8x256xf32>
    %cst_22 = arith.constant 0.000000e+00 : f32
    %72 = vector.broadcast %cst_22 : f32 to vector<8x256xf32>
    %73 = arith.maximumf %71, %72 : vector<8x256xf32>
    %c0_23 = arith.constant 0 : index
    %c0_24 = arith.constant 0 : index
    %74 = vector.load %arg5[%c0_23, %c0_24] : memref<72x8xbf16, #tpu.memory_space<vmem>>, vector<72x8xbf16>
    %75 = arith.truncf %73 : vector<8x256xf32> to vector<8x256xbf16>
    %cst_25 = arith.constant dense<0.000000e+00> : vector<72x256xf32>
    %76 = tpu.matmul %74, %75, %cst_25 {dimension_numbers = #tpu.dot_dimension_numbers<[1], [0], [0], [1], [0, 0, 1, 1], [], []>} : vector<72x8xbf16>, vector<8x256xbf16>, vector<72x256xf32> -> vector<72x256xf32>
    %cst_26 = arith.constant 0.000000e+00 : f32
    %77 = vector.broadcast %cst_26 : f32 to vector<8x256xf32>
    %78 = vector.extract_strided_slice %76 {offsets = [0, 0], sizes = [8, 256], strides = [1, 1]} : vector<72x256xf32> to vector<8x256xf32>
    %c17_i32_27 = arith.constant 17 : i32
    %79 = tpu.dynamic_rotate %78 by %c17_i32_27 dim 1 : vector<8x256xf32>, i32 -> vector<8x256xf32>
    %cst_28 = arith.constant 0.000000e+00 : f32
    %80 = vector.broadcast %cst_28 : f32 to vector<8x256xf32>
    %81 = arith.select %15, %79, %80 : vector<8x256xi1>, vector<8x256xf32>
    %82 = arith.addf %77, %81 : vector<8x256xf32>
    %83 = vector.extract_strided_slice %76 {offsets = [8, 0], sizes = [8, 256], strides = [1, 1]} : vector<72x256xf32> to vector<8x256xf32>
    %c16_i32_29 = arith.constant 16 : i32
    %84 = tpu.dynamic_rotate %83 by %c16_i32_29 dim 1 : vector<8x256xf32>, i32 -> vector<8x256xf32>
    %cst_30 = arith.constant 0.000000e+00 : f32
    %85 = vector.broadcast %cst_30 : f32 to vector<8x256xf32>
    %86 = arith.select %8, %84, %85 : vector<8x256xi1>, vector<8x256xf32>
    %87 = arith.addf %82, %86 : vector<8x256xf32>
    %88 = vector.extract_strided_slice %76 {offsets = [16, 0], sizes = [8, 256], strides = [1, 1]} : vector<72x256xf32> to vector<8x256xf32>
    %c15_i32_31 = arith.constant 15 : i32
    %89 = tpu.dynamic_rotate %88 by %c15_i32_31 dim 1 : vector<8x256xf32>, i32 -> vector<8x256xf32>
    %cst_32 = arith.constant 0.000000e+00 : f32
    %90 = vector.broadcast %cst_32 : f32 to vector<8x256xf32>
    %91 = arith.select %16, %89, %90 : vector<8x256xi1>, vector<8x256xf32>
    %92 = arith.addf %87, %91 : vector<8x256xf32>
    %93 = vector.extract_strided_slice %76 {offsets = [24, 0], sizes = [8, 256], strides = [1, 1]} : vector<72x256xf32> to vector<8x256xf32>
    %c1_i32_33 = arith.constant 1 : i32
    %94 = tpu.dynamic_rotate %93 by %c1_i32_33 dim 1 : vector<8x256xf32>, i32 -> vector<8x256xf32>
    %cst_34 = arith.constant 0.000000e+00 : f32
    %95 = vector.broadcast %cst_34 : f32 to vector<8x256xf32>
    %96 = arith.select %12, %94, %95 : vector<8x256xi1>, vector<8x256xf32>
    %97 = arith.addf %92, %96 : vector<8x256xf32>
    %98 = vector.extract_strided_slice %76 {offsets = [32, 0], sizes = [8, 256], strides = [1, 1]} : vector<72x256xf32> to vector<8x256xf32>
    %99 = arith.addf %97, %98 : vector<8x256xf32>
    %100 = vector.extract_strided_slice %76 {offsets = [40, 0], sizes = [8, 256], strides = [1, 1]} : vector<72x256xf32> to vector<8x256xf32>
    %c255_i32_35 = arith.constant 255 : i32
    %101 = tpu.dynamic_rotate %100 by %c255_i32_35 dim 1 : vector<8x256xf32>, i32 -> vector<8x256xf32>
    %cst_36 = arith.constant 0.000000e+00 : f32
    %102 = vector.broadcast %cst_36 : f32 to vector<8x256xf32>
    %103 = arith.select %14, %101, %102 : vector<8x256xi1>, vector<8x256xf32>
    %104 = arith.addf %99, %103 : vector<8x256xf32>
    %105 = vector.extract_strided_slice %76 {offsets = [48, 0], sizes = [8, 256], strides = [1, 1]} : vector<72x256xf32> to vector<8x256xf32>
    %c241_i32_37 = arith.constant 241 : i32
    %106 = tpu.dynamic_rotate %105 by %c241_i32_37 dim 1 : vector<8x256xf32>, i32 -> vector<8x256xf32>
    %cst_38 = arith.constant 0.000000e+00 : f32
    %107 = vector.broadcast %cst_38 : f32 to vector<8x256xf32>
    %108 = arith.select %17, %106, %107 : vector<8x256xi1>, vector<8x256xf32>
    %109 = arith.addf %104, %108 : vector<8x256xf32>
    %110 = vector.extract_strided_slice %76 {offsets = [56, 0], sizes = [8, 256], strides = [1, 1]} : vector<72x256xf32> to vector<8x256xf32>
    %c240_i32_39 = arith.constant 240 : i32
    %111 = tpu.dynamic_rotate %110 by %c240_i32_39 dim 1 : vector<8x256xf32>, i32 -> vector<8x256xf32>
    %cst_40 = arith.constant 0.000000e+00 : f32
    %112 = vector.broadcast %cst_40 : f32 to vector<8x256xf32>
    %113 = arith.select %10, %111, %112 : vector<8x256xi1>, vector<8x256xf32>
    %114 = arith.addf %109, %113 : vector<8x256xf32>
    %115 = vector.extract_strided_slice %76 {offsets = [64, 0], sizes = [8, 256], strides = [1, 1]} : vector<72x256xf32> to vector<8x256xf32>
    %c239_i32_41 = arith.constant 239 : i32
    %116 = tpu.dynamic_rotate %115 by %c239_i32_41 dim 1 : vector<8x256xf32>, i32 -> vector<8x256xf32>
    %cst_42 = arith.constant 0.000000e+00 : f32
    %117 = vector.broadcast %cst_42 : f32 to vector<8x256xf32>
    %118 = arith.select %18, %116, %117 : vector<8x256xi1>, vector<8x256xf32>
    %119 = arith.addf %114, %118 : vector<8x256xf32>
    %c0_43 = arith.constant 0 : index
    %c0_44 = arith.constant 0 : index
    %120 = vector.load %arg6[%c0_43, %c0_44] : memref<8x1xf32, #tpu.memory_space<vmem>>, vector<8x1xf32>
    %121 = vector.broadcast %120 : vector<8x1xf32> to vector<8x256xf32>
    %122 = arith.mulf %119, %121 : vector<8x256xf32>
    %c0_45 = arith.constant 0 : index
    %c0_46 = arith.constant 0 : index
    %123 = vector.load %arg7[%c0_45, %c0_46] : memref<8x1xf32, #tpu.memory_space<vmem>>, vector<8x1xf32>
    %124 = vector.broadcast %123 : vector<8x1xf32> to vector<8x256xf32>
    %125 = arith.addf %122, %124 : vector<8x256xf32>
    %126 = arith.addf %22, %125 : vector<8x256xf32>
    %cst_47 = arith.constant 0.000000e+00 : f32
    %127 = vector.broadcast %cst_47 : f32 to vector<8x256xf32>
    %128 = arith.maximumf %126, %127 : vector<8x256xf32>
    %129 = arith.truncf %128 : vector<8x256xf32> to vector<8x256xbf16>
    %c0_48 = arith.constant 0 : index
    %c0_49 = arith.constant 0 : index
    %c0_50 = arith.constant 0 : index
    %130 = vector.load %arg8[%c0_48, %c0_49, %c0_50] : memref<1x8x256xbf16, #tpu.memory_space<vmem>>, vector<1x8x256xbf16>
    %131 = vector.shape_cast %130 : vector<1x8x256xbf16> to vector<8x256xbf16>
    %132 = vector.shape_cast %129 : vector<8x256xbf16> to vector<1x8x256xbf16>
    tpu.vector_store %arg8[%c0_48, %c0_49, %c0_50], %132 {strides = array<i32>} : memref<1x8x256xbf16, #tpu.memory_space<vmem>>, vector<1x8x256xbf16>,
    return
  }
  func.func @transform_0(%arg0: i32) -> (i32, i32, i32) {
    %c0_i32 = arith.constant 0 : i32
    %c0_i32_0 = arith.constant 0 : i32
    %c0_i32_1 = arith.constant 0 : i32
    return %arg0, %c0_i32, %c0_i32_0 : i32, i32, i32
  }
  func.func @transform_1(%arg0: i32) -> (i32, i32) {
    %c0_i32 = arith.constant 0 : i32
    %c0_i32_0 = arith.constant 0 : i32
    %c0_i32_1 = arith.constant 0 : i32
    return %c0_i32, %c0_i32_0 : i32, i32
  }
  func.func @transform_2(%arg0: i32) -> (i32, i32) {
    %c0_i32 = arith.constant 0 : i32
    %c0_i32_0 = arith.constant 0 : i32
    %c0_i32_1 = arith.constant 0 : i32
    return %c0_i32, %c0_i32_0 : i32, i32
  }
  func.func @transform_3(%arg0: i32) -> (i32, i32) {
    %c0_i32 = arith.constant 0 : i32
    %c0_i32_0 = arith.constant 0 : i32
    %c0_i32_1 = arith.constant 0 : i32
    return %c0_i32, %c0_i32_0 : i32, i32
  }
  func.func @transform_4(%arg0: i32) -> (i32, i32) {
    %c0_i32 = arith.constant 0 : i32
    %c0_i32_0 = arith.constant 0 : i32
    %c0_i32_1 = arith.constant 0 : i32
    return %c0_i32, %c0_i32_0 : i32, i32
  }
  func.func @transform_5(%arg0: i32) -> (i32, i32) {
    %c0_i32 = arith.constant 0 : i32
    %c0_i32_0 = arith.constant 0 : i32
    %c0_i32_1 = arith.constant 0 : i32
    return %c0_i32, %c0_i32_0 : i32, i32
  }
  func.func @transform_6(%arg0: i32) -> (i32, i32) {
    %c0_i32 = arith.constant 0 : i32
    %c0_i32_0 = arith.constant 0 : i32
    %c0_i32_1 = arith.constant 0 : i32
    return %c0_i32, %c0_i32_0 : i32, i32
  }
  func.func @transform_7(%arg0: i32) -> (i32, i32, i32) {
    %c0_i32 = arith.constant 0 : i32
    %c0_i32_0 = arith.constant 0 : i32
    %c0_i32_1 = arith.constant 0 : i32
    return %arg0, %c0_i32, %c0_i32_0 : i32, i32, i32
  }
}

</mosaic_0001>

<bundles_post_ra>
// kernel: basic_block_forward.1
= control target key start
LH: loop header
LB: loop body
LE: loop exit
PB: predicated region body
PF: predicated region fallthrough
CT: control target
= control target key end

     0   :  { %s983_s24 = smov 0   ;;  %s1300_s0 = inlined_call_operand.vmem [shape: f32[2,4,256], index: 0, kind: input, shape index: {}]   ;;  %s1301_s1 = inlined_call_operand.vmem [shape: bf16[80,4], index: 1, kind: input, shape index: {}]   ;;  %s1302_s2 = inlined_call_operand.vmem [shape: f32[8,1], index: 2, kind: input, shape index: {}]   ;;  %s1303_s3 = inlined_call_operand.vmem [shape: f32[8,1], index: 3, kind: input, shape index: {}]   ;;  %s1304_s4 = inlined_call_operand.vmem [shape: bf16[72,8], index: 4, kind: input, shape index: {}]   ;;  %s1305_s5 = inlined_call_operand.vmem [shape: f32[8,1], index: 5, kind: input, shape index: {}]   ;;  %s1306_s6 = inlined_call_operand.vmem [shape: f32[8,1], index: 6, kind: input, shape index: {}]   ;;  %s1307_s7 = inlined_call_operand.vmem [shape: bf16[2,8,256], index: 7, kind: output, shape index: {}]  }
   0x1 LB: > { %s828_s25 = sadd.s32 4294967295, %s932_s24   ;;  %p832_p0 = scmp.ge.s32.totalorder %s932_s24, 1  ;;  %s932_s24 = sphi %s983_s24, %s17_s24  }
   0x2   : > { %p237_p1 = scmp.lt.s32.totalorder %s932_s24, 3 }
   0x4   : > { %p238_p2 = pnand %p832_p0, %p237_p1 }
   0x5   : > { %p269_p3 = scmp.lt.s32.totalorder (!%p238_p2), %s828_s25, 1  ;;  %s934_s17 = smov (!%p238_p2), 17  }
   0x6   : > { %241 = sbr.rel (%p238_p2) target bundleno = 676 (0x2a4), region = 48  ;;  %s935_s18 = smov (!%p238_p2), 16  }
   0x7   : > { %s936_s19 = smov (!%p238_p2), 15   ;;  %s937_s20 = smov (!%p238_p2), 1  }
   0x8   : > { %s939_s21 = smov (!%p238_p2), 127   ;;  %s940_s22 = smov (!%p238_p2), 113  }
   0x9   : > { %s941_s23 = smov (!%p238_p2), 112  }
   0xb   : > { %s1332_s25 = smov (!%p269_p3, %s828_s25), 1  ;;  %vm363_vm0 = vcmask 1041408   ;;  %v897_v7 = vld [vmem:[%s1301_s1] sm:$0xff]  ;;  %vm347_vm1 = vcmask 31744   ;;  %v898_v8 = vld [vmem:[%s1301_s1 + $0x8] sm:$0xff]  ;;  %v899_v9 = vld [vmem:[%s1301_s1 + $0x10] sm:$0xff]  ;;  %v281_v37 = vlaneseq }
   0xc   : > { %s895_s26 = sshll.u32 %s1332_s25, 3  ;;  %v900_v10 = vld [vmem:[%s1301_s1 + $0x18] sm:$0xff]  ;;  %v901_v11 = vld [vmem:[%s1301_s1 + $0x20] sm:$0xff]  ;;  %v938_v22 = vmov 0  }
   0xd   : > { %s273_s29 = scalar_lea.vmem %s1300_s0, %s895_s26  ;;  %923 = vset.pattern.permute.xlu1 %v938_v22  ;;  %924 = vset.pattern.permute.xlu2 %v938_v22  ;;  %v528_v29 = vld [vmem:[%s1302_s2] sm:$0xff]  ;;  %v1040_v40 = vand.u32 127, %v281_v37 }
   0xe   : > { %v280_v0 = vld [vmem:[%s273_s29] sm:$0xff]  ;;  %925 = vset.pattern.permute.xlu0 %v938_v22  ;;  %s942_s29 = smov 111  }
   0xf   : > { %305 = vst [vmem:[#allocation1] ss:$2 sm:$0xff] %v280_v0  ;;  %v536_v32 = vld [vmem:[%s1303_s3] sm:$0xff]  ;;  %v283_v41 = vadd.s32 128, %v1040_v40  ;;  %v284_v43 = vand.u32 255, %v1040_v40  ;;  %v286_v44 = vand.u32 15, %v1040_v40 }
  0x10   : > { %vm453_vm2 = vcmp.lt.s32.totalorder %v1040_v40, 16  ;;  %vm442_vm4 = vcmp.lt.s32.totalorder %v1040_v40, 17  ;;  %vm464_vm6 = vcmp.lt.s32.totalorder %v1040_v40, 15  ;;  %vm475_vm10 = vcmp.lt.s32.totalorder %v1040_v40, 1 }
  0x11   : > { %vm1046_vm3 = vcmp.ge.s32.totalorder %v286_v44, 1  ;;  %v287_v48 = vand.u32 15, %v283_v41  ;;  %vm1053_vm5 = vcmp.ge.s32.totalorder %v284_v43, 16  ;;  %vm1070_vm9 = vcmp.le.s32.totalorder %v286_v44, 14 }
  0x12   : > { %vm296_vm8 = vmand %vm1053_vm5, %vm1046_vm3  ;;  %vm1309_vm13 = vcmp.lt.s32.totalorder %v1040_v40, 127  ;;  %vm1308_vm15 = vcmp.lt.s32.totalorder %v1040_v40, 113 }
  0x13   : > { %vm1058_vm7 = vcmp.ge.s32.totalorder %v287_v48, 1  ;;  %vm1079_vm11 = vcmp.le.s32.totalorder %v287_v48, 14  ;;  %vm298_vm12 = vmand %vm1053_vm5, %vm1070_vm9 }
  0x16   : > { %v306_v1 = vld.sshfl [vmem:[#allocation1] sm:$0xff pattern:$0x75316420]  ;;  %v307_v2 = vld.sshfl [vmem:[#allocation1 + $0x8] sm:$0xff pattern:$0x75316420] }
  0x17   : > { %v310_v3 = vpack.c.bf16 %v306_v1, %v306_v1  ;;  %v311_v4 = vpack.c.bf16 %v307_v2, %v307_v2 }
  0x19   : > { %v365_v5 = vsel %vm363_vm0, %v310_v3, 0  ;;  %v368_v6 = vsel %vm363_vm0, %v311_v4, 0  ;;  %vm510_vm0 = vcmp.lt.s32.totalorder %v1040_v40, 112 }
  0x1a   : > { %377 = vmatpush.bf16.msra.mxu0 %v365_v5  ;;  %411 = vmatpush.bf16.msra.mxu1 %v368_v6  ;;  %v285_v5 = vand.u32 255, %v283_v41 }
  0x1c   : > { %vm1114_vm14 = vcmp.lt.s32.totalorder %v285_v5, 240 }
  0x1d   : > { %857 = vmatmul.msk.bf16.vlgmr.msra.gmra.mxu0 %vm347_vm1, %v897_v7  ;;  %862 = vmatmul.msk.bf16.vlgmr.msra.gmra.mxu1 %vm347_vm1, %v897_v7 }
  0x2d   : > { %858 = vmatmul.msk.bf16.gmra.mxu0 %vm347_vm1, %v898_v8  ;;  %863 = vmatmul.msk.bf16.gmra.mxu1 %vm347_vm1, %v898_v8 }
  0x3d   : > { %859 = vmatmul.msk.bf16.gmra.mxu0 %vm347_vm1, %v899_v9  ;;  %864 = vmatmul.msk.bf16.gmra.mxu1 %vm347_vm1, %v899_v9 }
  0x4d   : > { %860 = vmatmul.msk.bf16.gmra.mxu0 %vm347_vm1, %v900_v10  ;;  %865 = vmatmul.msk.bf16.gmra.mxu1 %vm347_vm1, %v900_v10 }
  0x5d   : > { %866 = vmatmul.msk.bf16.gmra.mxu1 %vm347_vm1, %v901_v11  ;;  %861 = vmatmul.msk.bf16.gmra.mxu0 %vm347_vm1, %v901_v11  ;;  %vm301_vm1 = vmand %vm1114_vm14, %vm1058_vm7 }
  0x9a   : > { %v379_v12 = vpop.f32.mrf.mxu0  ;;  %v413_v13 = vpop.f32.mrf.mxu1 }
  0x9b   : > { %438 = vrot.lane.b32.xlu0 %v379_v12, %s934_s17 }
  0xa2   : > { %v381_v14 = vpop.f32.mrf.mxu0  ;;  %v415_v15 = vpop.f32.mrf.mxu1 }
  0xa3   : > { %440 = vrot.lane.b32.xlu0 %v413_v13, %s934_s17  ;;  %449 = vrot.lane.b32.xlu1 %v381_v14, %s935_s18 }
  0xaa   : > { %v384_v16 = vpop.f32.mrf.mxu0  ;;  %v418_v17 = vpop.f32.mrf.mxu1 }
  0xab   : > { %451 = vrot.lane.b32.xlu1 %v415_v15, %s935_s18  ;;  %460 = vrot.lane.b32.xlu2 %v384_v16, %s936_s19 }
  0xb2   : > { %v386_v18 = vpop.f32.mrf.mxu0  ;;  %v420_v19 = vpop.f32.mrf.mxu1 }
  0xb3   : > { %473 = vrot.lane.b32.xlu1 %v420_v19, %s937_s20  ;;  %462 = vrot.lane.b32.xlu2 %v418_v17, %s936_s19 }
  0xb4   : > { %471 = vrot.lane.b32.xlu0 %v386_v18, %s937_s20 }
  0xba   : > { %v1022_v20 = vpop.f32.mrf.mxu0  ;;  %v1024_v21 = vpop.f32.mrf.mxu1 }
  0xc2   : > { %v391_v23 = vpop.f32.mrf.mxu0  ;;  %v425_v24 = vpop.f32.mrf.mxu1 }
  0xc3   : > { %486 = vrot.lane.b32.xlu0 %v425_v24, %s939_s21  ;;  %484 = vrot.lane.b32.xlu2 %v391_v23, %s939_s21 }
  0xca   : > { %v394_v25 = vpop.f32.mrf.mxu0  ;;  %v428_v26 = vpop.f32.mrf.mxu1 }
  0xcb   : > { %497 = vrot.lane.b32.xlu2 %v428_v26, %s940_s22  ;;  %495 = vrot.lane.b32.xlu1 %v394_v25, %s940_s22 }
  0xd2   : > { %v396_v27 = vpop.f32.mrf.mxu0  ;;  %v430_v28 = vpop.f32.mrf.mxu1 }
  0xd3   : > { %508 = vrot.lane.b32.xlu1 %v430_v28, %s941_s23  ;;  %506 = vrot.lane.b32.xlu0 %v396_v27, %s941_s23 }
  0xda   : > { %v433_v30 = vpop.f32.mrf.mxu1  ;;  %v399_v31 = vpop.f32.mrf.mxu0 }
  0xdb   : > { %519 = vrot.lane.b32.xlu0 %v433_v30, %s942_s29  ;;  %531 = vperm.xlu1 %923, %v528_v29  }
  0xdc   : > { %517 = vrot.lane.b32.xlu2 %v399_v31, %s942_s29 }
  0xe4   : > { %539 = vperm.xlu2 %924, %v536_v32  }
 0x105   : > { %v461_v34 = vpop.permute.xlu2 %460 }
 0x10d   : > { %v439_v35 = vpop.permute.xlu0 %438  ;;  %v463_v38 = vpop.permute.xlu2 %462 }
 0x10e   : > { %v465_v58 = vsel %vm464_vm6, %v461_v34, %v463_v38  ;;  %v466_v59 = vsel %vm464_vm6, %v463_v38, %v461_v34 }
 0x10f   : > { %v467_v6 = vsel %vm298_vm12, %v466_v59, 0.0  ;;  %v468_v7 = vsel %vm1079_vm11, %v465_v58, 0.0 }
 0x115   : > { %v450_v33 = vpop.permute.xlu1 %449  ;;  %v441_v39 = vpop.permute.xlu0 %440 }
 0x116   : > { %v443_v52 = vsel %vm442_vm4, %v439_v35, %v441_v39  ;;  %v444_v53 = vsel %vm442_vm4, %v441_v39, %v439_v35 }
 0x117   : > { %v445_v60 = vsel %vm296_vm8, %v444_v53, 0.0  ;;  %v446_v61 = vsel %vm1058_vm7, %v443_v52, 0.0 }
 0x11d   : > { %v452_v36 = vpop.permute.xlu1 %451  ;;  %v485_v42 = vpop.permute.xlu2 %484 }
 0x11e   : > { %v455_v49 = vsel %vm453_vm2, %v452_v36, %v450_v33  ;;  %v454_v55 = vsel %vm453_vm2, %v450_v33, %v452_v36 }
 0x11f   : > { %v456_v56 = vsel %vm1053_vm5, %v455_v49, 0.0  ;;  %v459_v1 = vadd.f32 %v454_v55, %v446_v61 }
 0x120   : > { %v458_v0 = vadd.f32 %v456_v56, %v445_v60 }
 0x121   : > { %v470_v10 = vadd.f32 %v468_v7, %v459_v1  ;;  %v905_v1 = vld [vmem:[%s1304_s4 + $0x18] sm:$0xff] }
 0x122   : > { %v469_v11 = vadd.f32 %v467_v6, %v458_v0  ;;  %v904_v0 = vld [vmem:[%s1304_s4 + $0x10] sm:$0xff] }
 0x125   : > { %v474_v45 = vpop.permute.xlu1 %473  ;;  %v498_v4 = vpop.permute.xlu2 %497 }
 0x126   : > { %v472_v46 = vpop.permute.xlu0 %471 }
 0x127   : > { %v476_v2 = vsel %vm475_vm10, %v472_v46, %v474_v45  ;;  %v477_v3 = vsel %vm475_vm10, %v474_v45, %v472_v46 }
 0x128   : > { %v478_v8 = vsel %vm1046_vm3, %v477_v3, 0.0  ;;  %v479_v9 = vsel %vm1058_vm7, %v476_v2, 0.0  ;;  %v554_v2 = vld [vmem:[%s1304_s4 + $0x20] sm:$0xf] }
 0x129   : > { %v480_v13 = vadd.f32 %v478_v8, %v469_v11  ;;  %v481_v14 = vadd.f32 %v479_v9, %v470_v10  ;;  %v574_v3 = vunpack.c.l.b16 %v554_v2 }
 0x12b   : > { %v483_v26 = vadd.f32 %v481_v14, %v1024_v21  ;;  %v482_v27 = vadd.f32 %v480_v13, %v1022_v20 }
 0x135   : > { %v487_v62 = vpop.permute.xlu0 %486 }
 0x136   : > { %v489_v15 = vsel %vm1309_vm13, %v485_v42, %v487_v62  ;;  %v490_v16 = vsel %vm1309_vm13, %v487_v62, %v485_v42  ;;  %v518_v25 = vpop.permute.xlu2 %517  ;;  %vm1311_vm13 = vmand %vm1114_vm14, %vm1079_vm11  ;;  %v902_v62 = vld [vmem:[%s1304_s4] sm:$0xff] }
 0x137   : > { %v491_v23 = vsel %vm1070_vm9, %v489_v15, 0.0  ;;  %v492_v24 = vsel %vm1079_vm11, %v490_v16, 0.0 }
 0x138   : > { %v493_v31 = vadd.f32 %v491_v23, %v482_v27  ;;  %v494_v32 = vadd.f32 %v492_v24, %v483_v26  ;;  %v751_v24 = vld [vmem:[%s1305_s5] sm:$0xff] }
 0x139   : > { %v759_v27 = vld [vmem:[%s1306_s6] sm:$0xff] }
 0x13d   : > { %v496_v63 = vpop.permute.xlu1 %495 }
 0x13e   : > { %v500_v19 = vsel %vm1308_vm15, %v496_v63, %v498_v4  ;;  %v501_v22 = vsel %vm1308_vm15, %v498_v4, %v496_v63  ;;  %vm1310_vm15 = vcmp.lt.s32.totalorder %v1040_v40, 111  ;;  %v540_v46 = vpop.permute.xlu2 %539  ;;  %v903_v63 = vld [vmem:[%s1304_s4 + $0x8] sm:$0xff]  ;;  %v579_v4 = vpack.c.b16 %v574_v3, %v574_v3 }
 0x13f   : > { %v502_v29 = vsel %vm1046_vm3, %v500_v19, 0.0  ;;  %v503_v30 = vsel %vm301_vm1, %v501_v22, 0.0 }
 0x140   : > { %v504_v21 = vadd.f32 %v502_v29, %v493_v31  ;;  %v505_v34 = vadd.f32 %v503_v30, %v494_v32 }
 0x145   : > { %v509_v17 = vpop.permute.xlu1 %508  ;;  %v507_v18 = vpop.permute.xlu0 %506 }
 0x146   : > { %v512_v28 = vsel %vm510_vm0, %v509_v17, %v507_v18  ;;  %v511_v33 = vsel %vm510_vm0, %v507_v18, %v509_v17 }
 0x147   : > { %v514_v20 = vsel %vm1114_vm14, %v512_v28, 0.0  ;;  %v515_v36 = vadd.f32 %v511_v33, %v504_v21 }
 0x148   : > { %v516_v37 = vadd.f32 %v514_v20, %v505_v34 }
 0x14d   : > { %v520_v35 = vpop.permute.xlu0 %519  ;;  %v532_v43 = vpop.permute.xlu1 %531 }
 0x14e   : > { %v522_v38 = vsel %vm1310_vm15, %v518_v25, %v520_v35  ;;  %v523_v39 = vsel %vm1310_vm15, %v520_v35, %v518_v25  ;;  %vm596_vm15 = vcmask 1043456  }
 0x14f   : > { %v524_v41 = vsel %vm1070_vm9, %v522_v38, 0.0  ;;  %v525_v42 = vsel %vm1311_vm13, %v523_v39, 0.0  ;;  %vm580_vm13 = vcmask 64512  }
 0x150   : > { %v526_v44 = vadd.f32 %v524_v41, %v515_v36  ;;  %v527_v45 = vadd.f32 %v525_v42, %v516_v37 }
 0x152   : > { %v534_v48 = vmul.f32 %v532_v43, %v526_v44  ;;  %v535_v49 = vmul.f32 %v532_v43, %v527_v45 }
 0x154   : > { %v542_v52 = vadd.f32 %v540_v46, %v534_v48  ;;  %v543_v53 = vadd.f32 %v540_v46, %v535_v49 }
 0x156   : > { %v544_v55 = vmax.f32 %v542_v52, 0.0  ;;  %v545_v56 = vmax.f32 %v543_v53, 0.0 }
 0x158   : > { %v555_v58 = vpack.c.bf16 %v544_v55, %v544_v55  ;;  %v556_v59 = vpack.c.bf16 %v545_v56, %v545_v56 }
 0x15a   : > { %v598_v60 = vsel %vm596_vm15, %v555_v58, 0  ;;  %v601_v61 = vsel %vm596_vm15, %v556_v59, 0 }
 0x15b   : > { %610 = vmatpush.bf16.msra.mxu2 %v598_v60  ;;  %643 = vmatpush.bf16.msra.mxu3 %v601_v61 }
 0x15e   : > { %883 = vmatmul.msk.bf16.vlgmr.msra.gmra.mxu2 %vm580_vm13, %v902_v62  ;;  %888 = vmatmul.msk.bf16.vlgmr.msra.gmra.mxu3 %vm580_vm13, %v902_v62 }
 0x16e   : > { %884 = vmatmul.msk.bf16.gmra.mxu2 %vm580_vm13, %v903_v63  ;;  %889 = vmatmul.msk.bf16.gmra.mxu3 %vm580_vm13, %v903_v63 }
 0x17e   : > { %885 = vmatmul.msk.bf16.gmra.mxu2 %vm580_vm13, %v904_v0  ;;  %890 = vmatmul.msk.bf16.gmra.mxu3 %vm580_vm13, %v904_v0 }
 0x18e   : > { %886 = vmatmul.msk.bf16.gmra.mxu2 %vm580_vm13, %v905_v1  ;;  %891 = vmatmul.msk.bf16.gmra.mxu3 %vm580_vm13, %v905_v1 }
 0x19e   : > { %887 = vmatmul.msk.bf16.gmra.mxu2 %vm580_vm13, %v579_v4  ;;  %892 = vmatmul.msk.bf16.gmra.mxu3 %vm580_vm13, %v579_v4 }
 0x1e1   : > { %v612_v5 = vpop.f32.mrf.mxu2  ;;  %v645_v6 = vpop.f32.mrf.mxu3 }
 0x1e2   : > { %671 = vrot.lane.b32.xlu1 %v645_v6, %s934_s17  ;;  %669 = vrot.lane.b32.xlu0 %v612_v5, %s934_s17 }
 0x1e9   : > { %v614_v7 = vpop.f32.mrf.mxu2  ;;  %v647_v8 = vpop.f32.mrf.mxu3 }
 0x1ea   : > { %681 = vrot.lane.b32.xlu0 %v647_v8, %s935_s18  ;;  %679 = vrot.lane.b32.xlu2 %v614_v7, %s935_s18 }
 0x1f1   : > { %v617_v9 = vpop.f32.mrf.mxu2  ;;  %v650_v10 = vpop.f32.mrf.mxu3 }
 0x1f2   : > { %691 = vrot.lane.b32.xlu2 %v650_v10, %s936_s19  ;;  %689 = vrot.lane.b32.xlu1 %v617_v9, %s936_s19 }
 0x1f9   : > { %v619_v11 = vpop.f32.mrf.mxu2  ;;  %v652_v13 = vpop.f32.mrf.mxu3 }
 0x1fa   : > { %701 = vrot.lane.b32.xlu1 %v652_v13, %s937_s20  ;;  %699 = vrot.lane.b32.xlu0 %v619_v11, %s937_s20 }
 0x201   : > { %v1200_v14 = vpop.f32.mrf.mxu2  ;;  %v1202_v15 = vpop.f32.mrf.mxu3 }
 0x209   : > { %v624_v16 = vpop.f32.mrf.mxu2  ;;  %v657_v17 = vpop.f32.mrf.mxu3 }
 0x20a   : > { %713 = vrot.lane.b32.xlu0 %v657_v17, %s939_s21  ;;  %711 = vrot.lane.b32.xlu2 %v624_v16, %s939_s21 }
 0x211   : > { %v627_v18 = vpop.f32.mrf.mxu2  ;;  %v660_v19 = vpop.f32.mrf.mxu3 }
 0x212   : > { %723 = vrot.lane.b32.xlu2 %v660_v19, %s940_s22  ;;  %721 = vrot.lane.b32.xlu1 %v627_v18, %s940_s22 }
 0x219   : > { %v629_v22 = vpop.f32.mrf.mxu2  ;;  %v662_v23 = vpop.f32.mrf.mxu3 }
 0x21a   : > { %733 = vrot.lane.b32.xlu1 %v662_v23, %s941_s23  ;;  %731 = vrot.lane.b32.xlu0 %v629_v22, %s941_s23  ;;  %s278_s23 = scalar_lea.vmem %s1307_s7, %s895_s26 }
 0x221   : > { %v632_v25 = vpop.f32.mrf.mxu2  ;;  %v665_v26 = vpop.f32.mrf.mxu3 }
 0x222   : > { %754 = vperm.xlu1 %923, %v751_v24   ;;  %743 = vrot.lane.b32.xlu0 %v665_v26, %s942_s29 }
 0x223   : > { %741 = vrot.lane.b32.xlu2 %v632_v25, %s942_s29 }
 0x229   : > { %v667_v28 = vpop.f32.mrf.mxu3  ;;  %v634_v29 = vpop.f32.mrf.mxu2 }
 0x22b   : > { %762 = vperm.xlu2 %924, %v759_v27  }
 0x244   : > { %v680_v32 = vpop.permute.xlu2 %679 }
 0x24c   : > { %v692_v21 = vpop.permute.xlu2 %691 }
 0x254   : > { %v672_v30 = vpop.permute.xlu1 %671  ;;  %v670_v31 = vpop.permute.xlu0 %669 }
 0x255   : > { %v673_v38 = vsel %vm442_vm4, %v670_v31, %v672_v30  ;;  %v674_v39 = vsel %vm442_vm4, %v672_v30, %v670_v31 }
 0x256   : > { %v675_v52 = vsel %vm296_vm8, %v674_v39, 0.0  ;;  %v676_v53 = vsel %vm1058_vm7, %v673_v38, 0.0 }
 0x25c   : > { %v682_v20 = vpop.permute.xlu0 %681 }
 0x25d   : > { %v684_v37 = vsel %vm453_vm2, %v682_v20, %v680_v32  ;;  %v683_v43 = vsel %vm453_vm2, %v680_v32, %v682_v20  ;;  %vm1324_vm2 = vcmp.lt.s32.totalorder %v1040_v40, 127 }
 0x25e   : > { %v685_v44 = vsel %vm1053_vm5, %v684_v37, 0.0  ;;  %v688_v59 = vadd.f32 %v683_v43, %v676_v53  ;;  %vm1325_vm4 = vmmov %vm1324_vm2  ;;  %vm1326_vm5 = vcmp.lt.s32.totalorder %v1040_v40, 113 }
 0x25f   : > { %v687_v58 = vadd.f32 %v685_v44, %v675_v52 }
 0x264   : > { %v690_v33 = vpop.permute.xlu1 %689  ;;  %v712_v36 = vpop.permute.xlu2 %711 }
 0x265   : > { %v693_v41 = vsel %vm464_vm6, %v690_v33, %v692_v21  ;;  %v694_v42 = vsel %vm464_vm6, %v692_v21, %v690_v33  ;;  %vm1327_vm6 = vmmov %vm1326_vm5 }
 0x266   : > { %v695_v55 = vsel %vm298_vm12, %v694_v42, 0.0  ;;  %v696_v56 = vsel %vm1079_vm11, %v693_v41, 0.0 }
 0x267   : > { %v697_v63 = vadd.f32 %v695_v55, %v687_v58  ;;  %v698_v0 = vadd.f32 %v696_v56, %v688_v59 }
 0x26c   : > { %v702_v34 = vpop.permute.xlu1 %701  ;;  %v700_v35 = vpop.permute.xlu0 %699 }
 0x26d   : > { %v703_v48 = vsel %vm475_vm10, %v700_v35, %v702_v34  ;;  %v704_v49 = vsel %vm475_vm10, %v702_v34, %v700_v35  ;;  %v724_v62 = vpop.permute.xlu2 %723 }
 0x26e   : > { %v705_v60 = vsel %vm1046_vm3, %v704_v49, 0.0  ;;  %v706_v61 = vsel %vm1058_vm7, %v703_v48, 0.0  ;;  %vm1330_vm7 = vmand %vm1114_vm14, %vm1079_vm11 }
 0x26f   : > { %v707_v1 = vadd.f32 %v705_v60, %v697_v63  ;;  %v708_v50 = vadd.f32 %v706_v61, %v698_v0 }
 0x271   : > { %v710_v10 = vadd.f32 %v708_v50, %v1202_v15  ;;  %v709_v11 = vadd.f32 %v707_v1, %v1200_v14 }
 0x27c   : > { %v714_v45 = vpop.permute.xlu0 %713 }
 0x27d   : > { %v715_v2 = vsel %vm1324_vm2, %v712_v36, %v714_v45  ;;  %v716_v3 = vsel %vm1325_vm4, %v714_v45, %v712_v36  ;;  %v742_v16 = vpop.permute.xlu2 %741  ;;  %v401_v36 = vpop.f32.mrf.mxu0 }
 0x27e   : > { %v717_v8 = vsel %vm1070_vm9, %v715_v2, 0.0  ;;  %v718_v9 = vsel %vm1079_vm11, %v716_v3, 0.0 }
 0x27f   : > { %v719_v19 = vadd.f32 %v717_v8, %v709_v11  ;;  %v720_v22 = vadd.f32 %v718_v9, %v710_v10 }
 0x284   : > { %v722_v46 = vpop.permute.xlu1 %721 }
 0x285   : > { %v725_v6 = vsel %vm1326_vm5, %v722_v46, %v724_v62  ;;  %v726_v7 = vsel %vm1327_vm6, %v724_v62, %v722_v46  ;;  %v763_v21 = vpop.permute.xlu2 %762 }
 0x286   : > { %v727_v17 = vsel %vm1046_vm3, %v725_v6, 0.0  ;;  %v728_v18 = vsel %vm301_vm1, %v726_v7, 0.0  ;;  %vm1328_vm3 = vcmp.lt.s32.totalorder %v1040_v40, 111  ;;  %v435_v40 = vpop.f32.mrf.mxu1 }
 0x287   : > { %v729_v23 = vadd.f32 %v727_v17, %v719_v19  ;;  %v730_v24 = vadd.f32 %v728_v18, %v720_v22  ;;  %vm1329_vm8 = vmmov %vm1328_vm3 }
 0x28c   : > { %v734_v4 = vpop.permute.xlu1 %733  ;;  %v732_v5 = vpop.permute.xlu0 %731 }
 0x28d   : > { %v736_v13 = vsel %vm510_vm0, %v734_v4, %v732_v5  ;;  %v735_v15 = vsel %vm510_vm0, %v732_v5, %v734_v4 }
 0x28e   : > { %v738_v14 = vsel %vm1114_vm14, %v736_v13, 0.0  ;;  %v739_v26 = vadd.f32 %v735_v15, %v729_v23 }
 0x28f   : > { %v740_v47 = vadd.f32 %v738_v14, %v730_v24 }
 0x294   : > { %v744_v25 = vpop.permute.xlu0 %743  ;;  %v755_v32 = vpop.permute.xlu1 %754 }
 0x295   : > { %v745_v27 = vsel %vm1328_vm3, %v742_v16, %v744_v25  ;;  %v746_v51 = vsel %vm1329_vm8, %v744_v25, %v742_v16 }
 0x296   : > { %v747_v28 = vsel %vm1070_vm9, %v745_v27, 0.0  ;;  %v748_v29 = vsel %vm1330_vm7, %v746_v51, 0.0 }
 0x297   : > { %v749_v30 = vadd.f32 %v747_v28, %v739_v26  ;;  %v750_v31 = vadd.f32 %v748_v29, %v740_v47 }
 0x299   : > { %v757_v33 = vmul.f32 %v755_v32, %v749_v30  ;;  %v758_v20 = vmul.f32 %v755_v32, %v750_v31 }
 0x29b   : > { %v765_v34 = vadd.f32 %v763_v21, %v757_v33  ;;  %v766_v35 = vadd.f32 %v763_v21, %v758_v20 }
 0x29d   : > { %v767_v37 = vadd.f32 %v765_v34, %v401_v36  ;;  %v768_v54 = vadd.f32 %v766_v35, %v435_v40 }
 0x29f   : > { %v769_v38 = vmax.f32 %v767_v37, 0.0  ;;  %v770_v39 = vmax.f32 %v768_v54, 0.0 }
 0x2a1   : > { %v771_v57 = vpack.c.bf16 %v770_v39, %v769_v38 }
 0x2a3   : > { %772 = vst [vmem:[%s278_s23] sm:$0xff] %v771_v57 }
 0x2a4 PF: > { %s17_s24 = sadd.s32 1, %s932_s24  }
 0x2a5   : > { %p14_p4 = scmp.ge.s32.totalorder %s17_s24, 4  }
 0x2a7   :  { %16 = sbr.rel (!%p14_p4) target bundleno = 1 (0x1), region = 78 }

</bundles_post_ra>
